<compile_context>
chip_gen: v5e
topology: v5e:2x2
jax: 0.10.0
libtpu: 0.0.40
codegen_flags: <defaults>
</compile_context>

<pallas_src>
import jax
import jax.numpy as jnp
from jax.experimental import pallas as pl
from jax.experimental.pallas import tpu as pltpu


LANE = 128     # TPU lane width (last dim of a vreg)
SUBLANE = 8    # f32 sublane width (second-to-last dim of a vreg)


def _round_up(x, m):
    return (x + m - 1) // m * m


# --------------------------------------------------------------------------- #
# Kernel factory: one batch tile of the mean_net MLP
# --------------------------------------------------------------------------- #
def _make_mean_kernel(ob, obp, ac, acp):
    """ob/ac are the true feature dims; obp/acp their 128-lane padded versions."""

    def kernel(x_ref, w1_ref, b1_ref, w2_ref, b2_ref, w3_ref, b3_ref,
               mean_ref, xpad_ref):
        cdtype = w1_ref.dtype

        # ---- In-kernel lane padding of obs (no HBM amplification) ----------
        if obp == ob:
            x = x_ref[...].astype(cdtype)                        # already aligned
        else:
            # Zero every step (NOT only at program_id==0): with the batch axis
            # marked "parallel" a second TensorCore never sees step 0, so its
            # scratch pad lanes must be re-zeroed locally.  Cost is a tiny VMEM
            # pass, invisible next to the matmuls.
            xpad_ref[...] = jnp.zeros_like(xpad_ref)
            xpad_ref[:, :ob] = x_ref[...].astype(cdtype)         # masked lane store
            x = xpad_ref[...]                                    # [TB, obp]

        # ---- Layer 1: MXU matmul, f32 accumulate; bias + tanh in f32 -------
        h1 = jnp.tanh(
            jnp.dot(x, w1_ref[...], preferred_element_type=jnp.float32) + b1_ref[...]
        )                                                        # [TB, hp] f32
        # ---- Layer 2 --------------------------------------------------------
        h2 = jnp.tanh(
            jnp.dot(h1.astype(cdtype), w2_ref[...],
                    preferred_element_type=jnp.float32) + b2_ref[...]
        )                                                        # [TB, hp] f32
        # ---- Output layer (no activation) ------------------------------------
        mean = jnp.dot(h2.astype(cdtype), w3_ref[...],
                       preferred_element_type=jnp.float32) + b3_ref[...]   # [TB, acp]
        if acp != ac:
            mean = mean[:, :ac]                                  # value slice to true width
        mean_ref[...] = mean.astype(mean_ref.dtype)              # [TB, ac] narrow store

    return kernel


# --------------------------------------------------------------------------- #
# One-time parameter preparation (call once per rollout / weight update)
# --------------------------------------------------------------------------- #
def prepare_params(params, compute_dtype=jnp.bfloat16):
    """Zero-pad hidden/output feature dims to 128-lane multiples and cast matmul
    operands to compute_dtype.  Zero padding is exact: padded weights/biases are
    zero so padded units stay zero and contribute nothing downstream.  Biases
    stay f32 (added to the f32 MXU accumulator).  Do this ONCE, not per call."""
    w1, b1, w2, b2, w3, b3, logstd = params
    ob, h = w1.shape
    ac = w3.shape[1]
    obp, hp, acp = (_round_up(d, LANE) for d in (ob, h, ac))

    def pad2(a, rows, cols):
        return jnp.pad(a, ((0, rows - a.shape[0]), (0, cols - a.shape[1])))

    return dict(
        w1=pad2(w1, obp, hp).astype(compute_dtype),
        w2=pad2(w2, hp, hp).astype(compute_dtype),
        w3=pad2(w3, hp, acp).astype(compute_dtype),
        b1=pad2(b1, 1, hp).astype(jnp.float32),
        b2=pad2(b2, 1, hp).astype(jnp.float32),
        b3=pad2(b3, 1, acp).astype(jnp.float32),
        logstd=logstd.astype(jnp.float32),
        dims=(ob, h, ac),
        padded=(obp, hp, acp),
    )


# --------------------------------------------------------------------------- #
# Forward wrapper
# --------------------------------------------------------------------------- #
def mlp_policy_forward(obs, prep, *, batch_tile=1024):
    """Forward pass of MLPPolicy (continuous, stochastic branch).

    Returns (mean, std): the parameters of the Normal action distribution,
    with std = exp(logstd) broadcast over the batch (as torch's Normal does).
    """
    ob, _h, ac = prep["dims"]
    obp, hp, acp = prep["padded"]
    w1p, b1p, w2p, b2p, w3p, b3p = (prep[k] for k in ("w1", "b1", "w2", "b2", "w3", "b3"))
    cdtype = w1p.dtype

    B = obs.shape[0]
    assert obs.shape[1] == ob

    # Batch tiling: balance tiles to minimize padding, sublane-align, and use
    # >= 2 tiles whenever possible so v7x's two TensorCores both get work under
    # dimension_semantics=("parallel",); the extra grid step is noise on v5e/v6e.
    n_tiles = pl.cdiv(B, batch_tile)
    if B > SUBLANE:
        n_tiles = max(n_tiles, 2)
    TB = _round_up(pl.cdiv(B, n_tiles), SUBLANE)
    Bp = _round_up(B, TB)
    grid = (Bp // TB,)

    # Only a small batch-dim pad (< TB rows) when needed — no lane inflation, no cast.
    obs_in = obs if Bp == B else jnp.pad(obs, ((0, Bp - B), (0, 0)))

    def resident(arr):  # weights/biases: same block every grid step -> stay in VMEM
        return pl.BlockSpec(arr.shape, lambda i: (0,) * arr.ndim)

    in_specs = [
        pl.BlockSpec((TB, ob), lambda i: (i, 0)),   # obs streams UNPADDED (last dim == full dim)
        resident(w1p), resident(b1p),
        resident(w2p), resident(b2p),
        resident(w3p), resident(b3p),
    ]
    out_specs = pl.BlockSpec((TB, ac), lambda i: (i, 0))   # narrow output, only ac lanes to HBM

    obs_isz = jnp.dtype(obs.dtype).itemsize
    cisz = jnp.dtype(cdtype).itemsize

    # Honest cost hint for the XLA scheduler (actual traffic / work).
    weight_bytes = cisz * (obp * hp + hp * hp + hp * acp) + 4 * (hp + hp + acp)
    flops = int(2 * Bp * (obp * hp + hp * hp + hp * acp))
    transcendentals = int(2 * Bp * hp)                       # two tanh layers
    bytes_accessed = int(Bp * ob * obs_isz + weight_bytes + Bp * ac * 4)

    # VMEM budget from actual need: (double-buffered) resident weights,
    # double-buffered obs/mean tiles, the x-pad scratch and f32 intermediates.
    vmem_needed = (2 * weight_bytes
                   + 2 * TB * (ob * obs_isz + ac * 4)
                   + TB * obp * cisz
                   + 4 * TB * (hp + hp + acp))
    vmem_limit = int(min(max(2 * vmem_needed, 4 << 20), 32 << 20))

    mean_p = pl.pallas_call(
        _make_mean_kernel(ob, obp, ac, acp),
        grid=grid,
        in_specs=in_specs,
        out_specs=out_specs,
        out_shape=jax.ShapeDtypeStruct((Bp, ac), jnp.float32),
        scratch_shapes=[pltpu.VMEM((TB, obp), cdtype)],      # persistent x-pad buffer
        compiler_params=pltpu.CompilerParams(
            dimension_semantics=("parallel",),               # shard batch tiles across v7x's 2 TCs
            vmem_limit_bytes=vmem_limit,
        ),
        cost_estimate=pl.CostEstimate(
            flops=flops,
            transcendentals=transcendentals,
            bytes_accessed=bytes_accessed,
        ),
    )(obs_in, w1p, b1p, w2p, b2p, w3p, b3p)

    mean = mean_p if Bp == B else mean_p[:B]
    # std = exp(logstd) is obs-independent: one tiny op outside the kernel,
    # broadcast over batch exactly the way Normal(mean, std) would.
    std = jnp.broadcast_to(jnp.exp(prep["logstd"]), mean.shape)
    return mean, std


# --------------------------------------------------------------------------- #
# Params / reference
# --------------------------------------------------------------------------- #
def init_params(key, ob_dim, ac_dim, hidden):
    """Deterministic init mimicking torch.nn.Linear default (uniform +-1/sqrt(fan_in));
    logstd initialized to zeros as in the module."""
    ks = jax.random.split(key, 6)

    def linear(kw, kb, fan_in, fan_out):
        bound = 1.0 / jnp.sqrt(fan_in)
        w = jax.random.uniform(kw, (fan_in, fan_out), jnp.float32, -bound, bound)
        b = jax.random.uniform(kb, (1, fan_out), jnp.float32, -bound, bound)
        return w, b

    w1, b1 = linear(ks[0], ks[1], ob_dim, hidden)
    w2, b2 = linear(ks[2], ks[3], hidden, hidden)
    w3, b3 = linear(ks[4], ks[5], hidden, ac_dim)
    logstd = jnp.zeros((ac_dim,), jnp.float32)   # nn.Parameter(torch.zeros(ac_dim))
    return (w1, b1, w2, b2, w3, b3, logstd)


def reference_forward(obs, params):
    w1, b1, w2, b2, w3, b3, logstd = params
    h1 = jnp.tanh(obs @ w1 + b1)
    h2 = jnp.tanh(h1 @ w2 + b2)
    mean = h2 @ w3 + b3
    std = jnp.broadcast_to(jnp.exp(logstd), mean.shape)
    return mean, std


if __name__ == "__main__":
    key = jax.random.PRNGKey(0)
    k_obs, k_obs2, k_params = jax.random.split(key, 3)

    B, OB_DIM, AC_DIM, HIDDEN = 8, 16, 8, 32   # small shapes consistent with the MLP policy
    obs = jax.random.normal(k_obs, (B, OB_DIM), jnp.float32)
    params = init_params(k_params, OB_DIM, AC_DIM, HIDDEN)
    mean_ref, std_ref = reference_forward(obs, params)

    # --- f32 compute path: exact match vs reference (single tile) -------------
    prep_f32 = prepare_params(params, compute_dtype=jnp.float32)
    mean, std = mlp_policy_forward(obs, prep_f32)
    jax.block_until_ready((mean, std))
    assert mean.shape == (B, AC_DIM) and std.shape == (B, AC_DIM)
    assert jnp.allclose(mean, mean_ref, atol=1e-5, rtol=1e-5)
    assert jnp.allclose(std, std_ref, atol=1e-6, rtol=1e-6)

    # --- default bf16 operand path (f32 accumulate): looser tolerance ---------
    prep_bf16 = prepare_params(params)   # compute_dtype=bfloat16 default
    mean_bf, std_bf = mlp_policy_forward(obs, prep_bf16)
    jax.block_until_ready((mean_bf, std_bf))
    assert jnp.allclose(mean_bf, mean_ref, atol=5e-2, rtol=5e-2)
    assert jnp.allclose(std_bf, std_ref, atol=1e-6, rtol=1e-6)

    # --- multi-tile case: exercises grid > 1 and the padded last tile ---------
    B2 = 50
    obs2 = jax.random.normal(k_obs2, (B2, OB_DIM), jnp.float32)
    mean2, std2 = mlp_policy_forward(obs2, prep_f32, batch_tile=16)
    jax.block_until_ready((mean2, std2))
    mean2_ref, std2_ref = reference_forward(obs2, params)
    assert mean2.shape == (B2, AC_DIM)
    assert jnp.allclose(mean2, mean2_ref, atol=1e-5, rtol=1e-5)
    assert jnp.allclose(std2, std2_ref, atol=1e-6, rtol=1e-6)

    # TODO(synk): discrete branch (Categorical(logits=...) sampling), the deterministic
    # Delta branch, and Adam updates are training-loop concerns outside this forward
    # hot path (the discrete logits net would reuse this same kernel for its logits).
    print("KERNEL_OK")
</pallas_src>

<mosaic_0001>
module attributes {stable_mosaic.version = 11 : i64} {
  func.func @kernel(%arg0: i32, %arg1: memref<8x16xf32, #tpu.memory_space<vmem>>, %arg2: memref<128x128xf32, #tpu.memory_space<vmem>>, %arg3: memref<1x128xf32, #tpu.memory_space<vmem>>, %arg4: memref<128x128xf32, #tpu.memory_space<vmem>>, %arg5: memref<1x128xf32, #tpu.memory_space<vmem>>, %arg6: memref<128x128xf32, #tpu.memory_space<vmem>>, %arg7: memref<1x128xf32, #tpu.memory_space<vmem>>, %arg8: memref<8x8xf32, #tpu.memory_space<vmem>>, %arg9: memref<8x128xf32, #tpu.memory_space<vmem>>) attributes {dimension_semantics = [#tpu.dimension_semantics<parallel>], iteration_bounds = array<i64: 1>, scalar_prefetch = 0 : i64, scratch_operands = 1 : i64, tpu.core_type = #tpu.core_type<tc>, window_params = [{transform_indices = @transform_0, window_bounds = array<i64: 8, 16>}, {pipeline_mode = #tpu.pipeline_mode<synchronous>, transform_indices = @transform_1, window_bounds = array<i64: 128, 128>}, {pipeline_mode = #tpu.pipeline_mode<synchronous>, transform_indices = @transform_2, window_bounds = array<i64: 1, 128>}, {pipeline_mode = #tpu.pipeline_mode<synchronous>, transform_indices = @transform_3, window_bounds = array<i64: 128, 128>}, {pipeline_mode = #tpu.pipeline_mode<synchronous>, transform_indices = @transform_4, window_bounds = array<i64: 1, 128>}, {pipeline_mode = #tpu.pipeline_mode<synchronous>, transform_indices = @transform_5, window_bounds = array<i64: 128, 128>}, {pipeline_mode = #tpu.pipeline_mode<synchronous>, transform_indices = @transform_6, window_bounds = array<i64: 1, 128>}, {transform_indices = @transform_7, window_bounds = array<i64: 8, 8>}]} {
    %cst = arith.constant 0.000000e+00 : f32
    %0 = vector.broadcast %cst : f32 to vector<8x128xf32>
    %c0 = arith.constant 0 : index
    %c0_0 = arith.constant 0 : index
    %1 = vector.load %arg9[%c0, %c0_0] : memref<8x128xf32, #tpu.memory_space<vmem>>, vector<8x128xf32>
    tpu.vector_store %arg9[%c0, %c0_0], %0 {strides = array<i32>} : memref<8x128xf32, #tpu.memory_space<vmem>>, vector<8x128xf32>,
    %c0_1 = arith.constant 0 : index
    %c0_2 = arith.constant 0 : index
    %2 = vector.load %arg1[%c0_1, %c0_2] : memref<8x16xf32, #tpu.memory_space<vmem>>, vector<8x16xf32>
    %c0_3 = arith.constant 0 : index
    %c0_4 = arith.constant 0 : index
    %3 = vector.load %arg9[%c0_3, %c0_4] : memref<8x128xf32, #tpu.memory_space<vmem>>, vector<8x16xf32>
    tpu.vector_store %arg9[%c0_3, %c0_4], %2 {strides = array<i32>} : memref<8x128xf32, #tpu.memory_space<vmem>>, vector<8x16xf32>,
    %c0_5 = arith.constant 0 : index
    %c0_6 = arith.constant 0 : index
    %4 = vector.load %arg9[%c0_5, %c0_6] : memref<8x128xf32, #tpu.memory_space<vmem>>, vector<8x128xf32>
    %c0_7 = arith.constant 0 : index
    %c0_8 = arith.constant 0 : index
    %5 = vector.load %arg2[%c0_7, %c0_8] : memref<128x128xf32, #tpu.memory_space<vmem>>, vector<128x128xf32>
    %cst_9 = arith.constant dense<0.000000e+00> : vector<8x128xf32>
    %6 = tpu.matmul %4, %5, %cst_9 {dimension_numbers = #tpu.dot_dimension_numbers<[1], [0], [0], [1], [0, 0, 1, 1], [], []>} : vector<8x128xf32>, vector<128x128xf32>, vector<8x128xf32> -> vector<8x128xf32>
    %c0_10 = arith.constant 0 : index
    %c0_11 = arith.constant 0 : index
    %7 = vector.load %arg3[%c0_10, %c0_11] : memref<1x128xf32, #tpu.memory_space<vmem>>, vector<1x128xf32>
    %8 = vector.broadcast %7 : vector<1x128xf32> to vector<8x128xf32>
    %9 = arith.addf %6, %8 : vector<8x128xf32>
    %10 = math.tanh %9 : vector<8x128xf32>
    %c0_12 = arith.constant 0 : index
    %c0_13 = arith.constant 0 : index
    %11 = vector.load %arg4[%c0_12, %c0_13] : memref<128x128xf32, #tpu.memory_space<vmem>>, vector<128x128xf32>
    %cst_14 = arith.constant dense<0.000000e+00> : vector<8x128xf32>
    %12 = tpu.matmul %10, %11, %cst_14 {dimension_numbers = #tpu.dot_dimension_numbers<[1], [0], [0], [1], [0, 0, 1, 1], [], []>} : vector<8x128xf32>, vector<128x128xf32>, vector<8x128xf32> -> vector<8x128xf32>
    %c0_15 = arith.constant 0 : index
    %c0_16 = arith.constant 0 : index
    %13 = vector.load %arg5[%c0_15, %c0_16] : memref<1x128xf32, #tpu.memory_space<vmem>>, vector<1x128xf32>
    %14 = vector.broadcast %13 : vector<1x128xf32> to vector<8x128xf32>
    %15 = arith.addf %12, %14 : vector<8x128xf32>
    %16 = math.tanh %15 : vector<8x128xf32>
    %c0_17 = arith.constant 0 : index
    %c0_18 = arith.constant 0 : index
    %17 = vector.load %arg6[%c0_17, %c0_18] : memref<128x128xf32, #tpu.memory_space<vmem>>, vector<128x128xf32>
    %cst_19 = arith.constant dense<0.000000e+00> : vector<8x128xf32>
    %18 = tpu.matmul %16, %17, %cst_19 {dimension_numbers = #tpu.dot_dimension_numbers<[1], [0], [0], [1], [0, 0, 1, 1], [], []>} : vector<8x128xf32>, vector<128x128xf32>, vector<8x128xf32> -> vector<8x128xf32>
    %c0_20 = arith.constant 0 : index
    %c0_21 = arith.constant 0 : index
    %19 = vector.load %arg7[%c0_20, %c0_21] : memref<1x128xf32, #tpu.memory_space<vmem>>, vector<1x128xf32>
    %20 = vector.broadcast %19 : vector<1x128xf32> to vector<8x128xf32>
    %21 = arith.addf %18, %20 : vector<8x128xf32>
    %22 = vector.extract_strided_slice %21 {offsets = [0, 0], sizes = [8, 8], strides = [1, 1]} : vector<8x128xf32> to vector<8x8xf32>
    %c0_22 = arith.constant 0 : index
    %c0_23 = arith.constant 0 : index
    %23 = vector.load %arg8[%c0_22, %c0_23] : memref<8x8xf32, #tpu.memory_space<vmem>>, vector<8x8xf32>
    tpu.vector_store %arg8[%c0_22, %c0_23], %22 {strides = array<i32>} : memref<8x8xf32, #tpu.memory_space<vmem>>, vector<8x8xf32>,
    return
  }
  func.func @transform_0(%arg0: i32) -> (i32, i32) {
    %c0_i32 = arith.constant 0 : i32
    %c0_i32_0 = arith.constant 0 : i32
    return %arg0, %c0_i32 : i32, i32
  }
  func.func @transform_1(%arg0: i32) -> (i32, i32) {
    %c0_i32 = arith.constant 0 : i32
    %c0_i32_0 = arith.constant 0 : i32
    %c0_i32_1 = arith.constant 0 : i32
    return %c0_i32, %c0_i32_0 : i32, i32
  }
  func.func @transform_2(%arg0: i32) -> (i32, i32) {
    %c0_i32 = arith.constant 0 : i32
    %c0_i32_0 = arith.constant 0 : i32
    %c0_i32_1 = arith.constant 0 : i32
    return %c0_i32, %c0_i32_0 : i32, i32
  }
  func.func @transform_3(%arg0: i32) -> (i32, i32) {
    %c0_i32 = arith.constant 0 : i32
    %c0_i32_0 = arith.constant 0 : i32
    %c0_i32_1 = arith.constant 0 : i32
    return %c0_i32, %c0_i32_0 : i32, i32
  }
  func.func @transform_4(%arg0: i32) -> (i32, i32) {
    %c0_i32 = arith.constant 0 : i32
    %c0_i32_0 = arith.constant 0 : i32
    %c0_i32_1 = arith.constant 0 : i32
    return %c0_i32, %c0_i32_0 : i32, i32
  }
  func.func @transform_5(%arg0: i32) -> (i32, i32) {
    %c0_i32 = arith.constant 0 : i32
    %c0_i32_0 = arith.constant 0 : i32
    %c0_i32_1 = arith.constant 0 : i32
    return %c0_i32, %c0_i32_0 : i32, i32
  }
  func.func @transform_6(%arg0: i32) -> (i32, i32) {
    %c0_i32 = arith.constant 0 : i32
    %c0_i32_0 = arith.constant 0 : i32
    %c0_i32_1 = arith.constant 0 : i32
    return %c0_i32, %c0_i32_0 : i32, i32
  }
  func.func @transform_7(%arg0: i32) -> (i32, i32) {
    %c0_i32 = arith.constant 0 : i32
    %c0_i32_0 = arith.constant 0 : i32
    return %arg0, %c0_i32 : i32, i32
  }
}

</mosaic_0001>

<bundles_post_ra>
// kernel: tpu_custom_call.1
= control target key start
LH: loop header
LB: loop body
LE: loop exit
PB: predicated region body
PF: predicated region fallthrough
CT: control target
= control target key end

     0   :  { %12 = vsyncpa [#allocation4], 0  ;;  %s451_s0 = inlined_call_operand.hbm [shape: f32[8,16], index: 0, kind: input, shape index: {}]   ;;  %s452_s1 = inlined_call_operand.hbm [shape: f32[128,128], index: 1, kind: input, shape index: {}]   ;;  %s453_s2 = inlined_call_operand.vmem [shape: f32[1,128], index: 2, kind: input, shape index: {}]   ;;  %s454_s3 = inlined_call_operand.hbm [shape: f32[128,128], index: 3, kind: input, shape index: {}]   ;;  %s455_s4 = inlined_call_operand.vmem [shape: f32[1,128], index: 4, kind: input, shape index: {}]   ;;  %s456_s5 = inlined_call_operand.hbm [shape: f32[128,128], index: 5, kind: input, shape index: {}]   ;;  %s457_s6 = inlined_call_operand.vmem [shape: f32[1,128], index: 6, kind: input, shape index: {}]   ;;  %s458_s7 = inlined_call_operand.hbm [shape: f32[8,8], index: 7, kind: output, shape index: {}]  }
   0x1   :  { %13 = vsyncpa [#allocation7], 0 }
   0x2   :  { %14 = vsyncpa [#allocation10], 0  ;;  %s31_s26 = sshll.u32 %s452_s1, 4  ;;  %s32_s26 = int_to_ptr.hbm [resolvable:$true] %s31_s26 }
   0x3   :  { %15 = vsyncpa [#allocation5], 0  ;;  %s379_s27 = smov [#allocation6]   ;;  %s21_s8 = sshll.u32 %s451_s0, 4  ;;  %s22_s8 = int_to_ptr.hbm [resolvable:$true] %s21_s8 }
   0x4   :  { %s33_s28 = sshll.u32 %s379_s27, 4  ;;  %s380_s9 = smov 128   ;;  %s34_s28 = int_to_ptr.vmem [resolvable:$true] %s33_s28 }
   0x5   :  { %s381_s10 = smov 8   ;;  %s382_s11 = smov [#allocation3]  }
   0x6   :  { %39 = dma.hbm_to_vmem [thread:$0]  %s32_s26, 2048, %s34_s28, [#allocation7], %s380_s9, %s380_s9, %s381_s10  }
   0x7   :  { %s23_s12 = sshll.u32 %s382_s11, 4  ;;  %s46_s15 = sshll.u32 %s454_s3, 4  ;;  %s24_s12 = int_to_ptr.vmem [resolvable:$true] %s23_s12  ;;  %s47_s15 = int_to_ptr.hbm [resolvable:$true] %s46_s15 }
   0x8   :  { %26 = dma.hbm_to_vmem [thread:$0]  %s22_s8, 128, %s24_s12, [#allocation4]  }
   0x9   :  { %s61_s17 = sshll.u32 %s456_s5, 4  ;;  %s383_s18 = smov [#allocation8]   ;;  %s62_s17 = int_to_ptr.hbm [resolvable:$true] %s61_s17 }
   0xa   :  { %s48_s19 = sshll.u32 %s383_s18, 4  ;;  %s384_s0 = smov [#allocation9]   ;;  %s49_s19 = int_to_ptr.vmem [resolvable:$true] %s48_s19 }
   0xb   :  { %54 = dma.hbm_to_vmem [thread:$0]  %s47_s15, 2048, %s49_s19, [#allocation7], %s380_s9, %s380_s9, %s381_s10  }
   0xc   :  { %s63_s20 = sshll.u32 %s384_s0, 4  ;;  %s64_s20 = int_to_ptr.vmem [resolvable:$true] %s63_s20 }
   0xd   :  { %69 = dma.hbm_to_vmem [thread:$0]  %s62_s17, 2048, %s64_s20, [#allocation10], %s380_s9, %s380_s9, %s381_s10  }
   0xe   :  { %371 = dma.done.wait [#allocation4], 128  }
   0xf   :  { %372 = vsyncadd [#allocation4], 4294967168 }
  0x10   :  { %373 = dma.done.wait [#allocation7], 4096  }
  0x11   :  { %374 = vsyncadd [#allocation7], 4294963200 }
  0x12   :  { %375 = dma.done.wait [#allocation10], 2048  }
  0x13   :  { %376 = vsyncadd [#allocation10], 4294965248  ;;  %v385_v0 = vmov 0.0   ;;  %v108_v1 = vld [vmem:[#allocation6 + $0x78] sm:$0xff]  ;;  %v107_v2 = vld [vmem:[#allocation6 + $0x70] sm:$0xff]  ;;  %vm90_vm0 = vcmask 130048  }
  0x14   :  { %88 = vst [vmem:[#allocation2] sm:$0xff] %v385_v0  ;;  %113 = vmatpush.msra.mxu0 %v108_v1  ;;  %v106_v3 = vld [vmem:[#allocation6 + $0x68] sm:$0xff]  ;;  %v105_v4 = vld [vmem:[#allocation6 + $0x60] sm:$0xff]  ;;  %v89_v5 = vld [vmem:[#allocation3] sm:$0xff]  ;;  %s386_s24 = smov [#allocation11]   ;;  %s224_s28 = sshll.u32 %s458_s7, 4  ;;  %s225_s28 = int_to_ptr.hbm [resolvable:$true] %s224_s28 }
  0x15   :  { %v149_v6 = vld [vmem:[#allocation8 + $0x78] sm:$0xff]  ;;  %91 = vst.msk [vmem:[#allocation2] sm:$0xff] %vm90_vm0, %v89_v5  ;;  %v148_v8 = vld [vmem:[#allocation8 + $0x70] sm:$0xff]  ;;  %v147_v9 = vld [vmem:[#allocation8 + $0x68] sm:$0xff]  ;;  %s222_s25 = sshll.u32 %s386_s24, 4  ;;  %vm215_vm1 = vcmask 64512   ;;  %s223_s25 = int_to_ptr.vmem [resolvable:$true] %s222_s25 }
  0x16   :  { %114 = vmatpush.msra.mxu0 %v107_v2  ;;  %v104_v7 = vld [vmem:[#allocation6 + $0x58] sm:$0xff]  ;;  %154 = vmatpush.msra.mxu1 %v149_v6  ;;  %v103_v10 = vld [vmem:[#allocation6 + $0x50] sm:$0xff]  ;;  %v146_v11 = vld [vmem:[#allocation8 + $0x60] sm:$0xff] }
  0x17   :  { %v102_v12 = vld [vmem:[#allocation6 + $0x48] sm:$0xff]  ;;  %v145_v13 = vld [vmem:[#allocation8 + $0x58] sm:$0xff]  ;;  %v101_v14 = vld [vmem:[#allocation6 + $0x40] sm:$0xff] }
  0x18   :  { %115 = vmatpush.msra.mxu0 %v106_v3  ;;  %155 = vmatpush.msra.mxu1 %v148_v8  ;;  %v144_v15 = vld [vmem:[#allocation8 + $0x50] sm:$0xff]  ;;  %v100_v16 = vld [vmem:[#allocation6 + $0x38] sm:$0xff]  ;;  %v143_v17 = vld [vmem:[#allocation8 + $0x48] sm:$0xff] }
  0x19   :  { %v99_v18 = vld [vmem:[#allocation6 + $0x30] sm:$0xff]  ;;  %v142_v19 = vld [vmem:[#allocation8 + $0x40] sm:$0xff]  ;;  %v98_v20 = vld [vmem:[#allocation6 + $0x28] sm:$0xff] }
  0x1a   :  { %116 = vmatpush.msra.mxu0 %v105_v4  ;;  %156 = vmatpush.msra.mxu1 %v147_v9  ;;  %v141_v21 = vld [vmem:[#allocation8 + $0x38] sm:$0xff]  ;;  %v97_v22 = vld [vmem:[#allocation6 + $0x20] sm:$0xff]  ;;  %v140_v23 = vld [vmem:[#allocation8 + $0x30] sm:$0xff] }
  0x1b   :  { %v96_v24 = vld [vmem:[#allocation6 + $0x18] sm:$0xff]  ;;  %v139_v25 = vld [vmem:[#allocation8 + $0x28] sm:$0xff]  ;;  %v95_v26 = vld [vmem:[#allocation6 + $0x10] sm:$0xff] }
  0x1c   :  { %117 = vmatpush.msra.mxu0 %v104_v7  ;;  %157 = vmatpush.msra.mxu1 %v146_v11  ;;  %v94_v27 = vld [vmem:[#allocation6 + $0x8] sm:$0xff]  ;;  %v93_v28 = vld [vmem:[#allocation6] sm:$0xff]  ;;  %v92_v29 = vld [vmem:[#allocation2] sm:$0xff] }
  0x1d   :  { %v138_v30 = vld [vmem:[#allocation8 + $0x20] sm:$0xff]  ;;  %v137_v31 = vld [vmem:[#allocation8 + $0x18] sm:$0xff]  ;;  %v136_v32 = vld [vmem:[#allocation8 + $0x10] sm:$0xff] }
  0x1e   :  { %118 = vmatpush.msra.mxu0 %v103_v10  ;;  %158 = vmatpush.msra.mxu1 %v145_v13  ;;  %v135_v33 = vld [vmem:[#allocation8 + $0x8] sm:$0xff]  ;;  %v134_v34 = vld [vmem:[#allocation8] sm:$0xff]  ;;  %v190_v35 = vld [vmem:[#allocation9 + $0x78] sm:$0xff] }
  0x1f   :  { %v189_v36 = vld [vmem:[#allocation9 + $0x70] sm:$0xff]  ;;  %195 = vmatpush.msra.mxu2 %v190_v35  ;;  %v188_v37 = vld [vmem:[#allocation9 + $0x68] sm:$0xff]  ;;  %v187_v38 = vld [vmem:[#allocation9 + $0x60] sm:$0xff] }
  0x20   :  { %119 = vmatpush.msra.mxu0 %v102_v12  ;;  %159 = vmatpush.msra.mxu1 %v144_v15  ;;  %v186_v39 = vld [vmem:[#allocation9 + $0x58] sm:$0xff]  ;;  %v185_v40 = vld [vmem:[#allocation9 + $0x50] sm:$0xff]  ;;  %v184_v41 = vld [vmem:[#allocation9 + $0x48] sm:$0xff] }
  0x21   :  { %196 = vmatpush.msra.mxu2 %v189_v36  ;;  %v183_v42 = vld [vmem:[#allocation9 + $0x40] sm:$0xff]  ;;  %v182_v43 = vld [vmem:[#allocation9 + $0x38] sm:$0xff]  ;;  %v181_v44 = vld [vmem:[#allocation9 + $0x30] sm:$0xff] }
  0x22   :  { %120 = vmatpush.msra.mxu0 %v101_v14  ;;  %160 = vmatpush.msra.mxu1 %v143_v17  ;;  %v180_v45 = vld [vmem:[#allocation9 + $0x28] sm:$0xff]  ;;  %v244_v46 = vld [vmem:[%s453_s2] ss:$0 sm:$0xff]  ;;  %v179_v50 = vld [vmem:[#allocation9 + $0x20] sm:$0xff] }
  0x23   :  { %197 = vmatpush.msra.mxu2 %v188_v37  ;;  %v178_v51 = vld [vmem:[#allocation9 + $0x18] sm:$0xff]  ;;  %v177_v52 = vld [vmem:[#allocation9 + $0x10] sm:$0xff]  ;;  %v176_v53 = vld [vmem:[#allocation9 + $0x8] sm:$0xff] }
  0x24   :  { %121 = vmatpush.msra.mxu0 %v100_v16  ;;  %161 = vmatpush.msra.mxu1 %v142_v19  ;;  %v175_v54 = vld [vmem:[#allocation9] sm:$0xff]  ;;  %v245_v55 = vld [vmem:[%s455_s4] ss:$0 sm:$0xff] }
  0x25   :  { %198 = vmatpush.msra.mxu2 %v187_v38  ;;  %v246_v59 = vld [vmem:[%s457_s6] ss:$0 sm:$0xff] }
  0x26   :  { %122 = vmatpush.msra.mxu0 %v99_v18  ;;  %162 = vmatpush.msra.mxu1 %v141_v21 }
  0x27   :  { %199 = vmatpush.msra.mxu2 %v186_v39 }
  0x28   :  { %123 = vmatpush.msra.mxu0 %v98_v20  ;;  %163 = vmatpush.msra.mxu1 %v140_v23 }
  0x29   :  { %200 = vmatpush.msra.mxu2 %v185_v40 }
  0x2a   :  { %124 = vmatpush.msra.mxu0 %v97_v22  ;;  %164 = vmatpush.msra.mxu1 %v139_v25 }
  0x2b   :  { %201 = vmatpush.msra.mxu2 %v184_v41 }
  0x2c   :  { %125 = vmatpush.msra.mxu0 %v96_v24  ;;  %165 = vmatpush.msra.mxu1 %v138_v30 }
  0x2d   :  { %202 = vmatpush.msra.mxu2 %v183_v42 }
  0x2e   :  { %126 = vmatpush.msra.mxu0 %v95_v26  ;;  %166 = vmatpush.msra.mxu1 %v137_v31 }
  0x2f   :  { %203 = vmatpush.msra.mxu2 %v182_v43 }
  0x30   :  { %127 = vmatpush.msra.mxu0 %v94_v27  ;;  %167 = vmatpush.msra.mxu1 %v136_v32 }
  0x31   :  { %204 = vmatpush.msra.mxu2 %v181_v44 }
  0x32   :  { %128 = vmatpush.msra.mxu0 %v93_v28  ;;  %168 = vmatpush.msra.mxu1 %v135_v33 }
  0x33   :  { %129 = vmatmul.f32.vlgmr.msra.gmra.mxu0 %v92_v29  ;;  %205 = vmatpush.msra.mxu2 %v180_v45 }
  0x34   :  { %169 = vmatpush.msra.mxu1 %v134_v34 }
  0x35   :  { %206 = vmatpush.msra.mxu2 %v179_v50 }
  0x37   :  { %207 = vmatpush.msra.mxu2 %v178_v51 }
  0x39   :  { %208 = vmatpush.msra.mxu2 %v177_v52 }
  0x3b   :  { %209 = vmatpush.msra.mxu2 %v176_v53 }
  0x3d   :  { %210 = vmatpush.msra.mxu2 %v175_v54 }
  0xb0   :  { %v130_v47 = vpop.f32.mrf.mxu0 }
  0xb1   :  { %v131_v48 = vadd.f32 %v244_v46, %v130_v47 }
  0xb3   :  { %247 = vtanh.f32 %v131_v48 }
  0xb9   :  { %v248_v49 = vpop.eup %247 }
  0xba   :  { %170 = vmatmul.f32.vlgmr.msra.gmra.mxu1 %v248_v49 }
 0x137   :  { %v171_v56 = vpop.f32.mrf.mxu1 }
 0x138   :  { %v172_v57 = vadd.f32 %v245_v55, %v171_v56 }
 0x13a   :  { %249 = vtanh.f32 %v172_v57 }
 0x140   :  { %v250_v58 = vpop.eup %249 }
 0x141   :  { %211 = vmatmul.f32.vlgmr.msra.gmra.mxu2 %v250_v58 }
 0x1c4   :  { %v212_v60 = vpop.f32.mrf.mxu2 }
 0x1c5   :  { %v213_v61 = vadd.f32 %v246_v59, %v212_v60 }
 0x1c7   :  { %216 = vst.msk [vmem:[#allocation11] sm:$0xff] %vm215_vm1, %v213_v61 }
 0x1c8   :  { %227 = dma.vmem_to_hbm [thread:$0]  %s223_s25, 128, %s225_s28, [#allocation5]  }
 0x1c9   :  { %377 = dma.done.wait [#allocation5], 128  }
 0x1ca   :  { %378 = vsyncadd [#allocation5], 4294967168 }
 0x1cb   :  { %232 = vsyncpa [#allocation4], 1 }
 0x1cc   :  { %233 = vsyncpa [#allocation7], 1 }
 0x1cd   :  { %234 = vsyncpa [#allocation10], 1 }
 0x1ce   :  { %235 = vsyncpa [#allocation5], 1 }

</bundles_post_ra>
